<compile_context>
chip_gen: v7x
topology: tpu7x:2x2x1
jax: 0.10.0
libtpu: 0.0.40
codegen_flags: <defaults>
</compile_context>

<pallas_src>
import functools

import jax
import jax.numpy as jnp
from jax.experimental import pallas as pl
from jax.experimental.pallas import tpu as pltpu


def _fused_actor_critic_kernel(
    x_ref, w1_ref, b1_ref, w2_ref, b2_ref, w3_ref, b3_ref, out_ref,
    *, num_actions,
):
    x = x_ref[...]  # already f32, no redundant cast

    # Shared fused MLP (actor columns 0..H-1, critic columns H..2H-1).
    h = jnp.tanh(
        jnp.dot(x, w1_ref[...], preferred_element_type=jnp.float32) + b1_ref[...]
    )
    h = jnp.tanh(
        jnp.dot(h, w2_ref[...], preferred_element_type=jnp.float32) + b2_ref[...]
    )
    z = jnp.dot(h, w3_ref[...], preferred_element_type=jnp.float32) + b3_ref[...]
    # z: [TB, A+1]; columns < A are actor logits, column A is the critic value.

    col = jax.lax.broadcasted_iota(jnp.int32, z.shape, dimension=1)
    is_logit = col < num_actions

    # Numerically stable masked softmax over the logit columns only.
    masked = jnp.where(is_logit, z, -jnp.inf)
    m = jnp.max(masked, axis=-1, keepdims=True)
    e = jnp.where(is_logit, jnp.exp(z - m), 0.0)
    denom = jnp.sum(e, axis=-1, keepdims=True)
    probs = e * pl.reciprocal(denom, approx=True)

    # probs in the logit columns, raw critic value in the last column.
    out_ref[...] = jnp.where(is_logit, probs, z).astype(out_ref.dtype)


def _pick_batch_tile(B, max_tile=1024):
    """Largest batch tile <= max_tile that is a multiple of 8 and divides B."""
    if B <= max_tile:
        return B
    for t in range(max_tile, 7, -8):
        if B % t == 0:
            return t
    return B  # fallback: single block


def actor_critic_forward(state, params):
    """Returns (action_probs [B, A], state_values [B, 1])."""
    B, state_dim = state.shape
    hidden = params["aw2"].shape[0]
    A = params["aw3"].shape[1]
    dt = jnp.float32

    # ---- fuse actor/critic weights (cheap XLA ops outside the kernel) -----
    w1f = jnp.concatenate([params["aw1"], params["cw1"]], axis=1)      # [S, 2H]
    b1f = jnp.concatenate([params["ab1"], params["cb1"]], axis=1)      # [1, 2H]

    zHH = jnp.zeros((hidden, hidden), dt)
    w2f = jnp.concatenate(
        [jnp.concatenate([params["aw2"], zHH], axis=1),
         jnp.concatenate([zHH, params["cw2"]], axis=1)],
        axis=0,
    )                                                                  # [2H, 2H]
    b2f = jnp.concatenate([params["ab2"], params["cb2"]], axis=1)      # [1, 2H]

    w3f = jnp.concatenate(
        [jnp.concatenate([params["aw3"], jnp.zeros((hidden, 1), dt)], axis=1),
         jnp.concatenate([jnp.zeros((hidden, A), dt), params["cw3"]], axis=1)],
        axis=0,
    )                                                                  # [2H, A+1]
    b3f = jnp.concatenate([params["ab3"], params["cb3"]], axis=1)      # [1, A+1]

    TB = _pick_batch_tile(B)
    grid = (pl.cdiv(B, TB),)

    def const_spec(shape):
        return pl.BlockSpec(shape, lambda i: (0, 0))

    out = pl.pallas_call(
        functools.partial(_fused_actor_critic_kernel, num_actions=A),
        out_shape=jax.ShapeDtypeStruct((B, A + 1), jnp.float32),
        grid=grid,
        in_specs=[
            pl.BlockSpec((TB, state_dim), lambda i: (i, 0)),  # batch-tiled state
            const_spec(w1f.shape), const_spec(b1f.shape),     # VMEM-resident
            const_spec(w2f.shape), const_spec(b2f.shape),
            const_spec(w3f.shape), const_spec(b3f.shape),
        ],
        out_specs=pl.BlockSpec((TB, A + 1), lambda i: (i, 0)),
        compiler_params=pltpu.CompilerParams(
            dimension_semantics=("parallel",),
        ),
    )(state, w1f, b1f, w2f, b2f, w3f, b3f)

    probs = out[:, :A]
    value = out[:, A:A + 1]
    return probs, value


def init_params(key, state_dim, action_dim):
    """Deterministic init mimicking nn.Linear's U(-1/sqrt(fan_in), +1/sqrt(fan_in))."""
    hidden = state_dim // 4

    def linear(k, fan_in, fan_out):
        kw, kb = jax.random.split(k)
        bound = 1.0 / jnp.sqrt(float(fan_in))
        w = jax.random.uniform(kw, (fan_in, fan_out), jnp.float32, -bound, bound)
        b = jax.random.uniform(kb, (1, fan_out), jnp.float32, -bound, bound)
        return w, b

    keys = jax.random.split(key, 6)
    aw1, ab1 = linear(keys[0], state_dim, hidden)
    aw2, ab2 = linear(keys[1], hidden, hidden)
    aw3, ab3 = linear(keys[2], hidden, action_dim)
    cw1, cb1 = linear(keys[3], state_dim, hidden)
    cw2, cb2 = linear(keys[4], hidden, hidden)
    cw3, cb3 = linear(keys[5], hidden, 1)
    return dict(
        aw1=aw1, ab1=ab1, aw2=aw2, ab2=ab2, aw3=aw3, ab3=ab3,
        cw1=cw1, cb1=cb1, cw2=cw2, cb2=cb2, cw3=cw3, cb3=cb3,
    )


def reference_forward(state, p):
    h = jnp.tanh(state @ p["aw1"] + p["ab1"])
    h = jnp.tanh(h @ p["aw2"] + p["ab2"])
    logits = h @ p["aw3"] + p["ab3"]
    probs = jax.nn.softmax(logits, axis=-1)
    g = jnp.tanh(state @ p["cw1"] + p["cb1"])
    g = jnp.tanh(g @ p["cw2"] + p["cb2"])
    value = g @ p["cw3"] + p["cb3"]
    return probs, value


if __name__ == "__main__":
    # Small shapes consistent with the module: state_dim divisible by 4,
    # the action masks in act() imply 4 actions.
    B, STATE_DIM, ACTION_DIM = 8, 32, 4

    key = jax.random.PRNGKey(0)
    k_state, k_params = jax.random.split(key)
    state = jax.random.normal(k_state, (B, STATE_DIM), jnp.float32)
    params = init_params(k_params, STATE_DIM, ACTION_DIM)

    probs, value = jax.jit(actor_critic_forward)(state, params)
    jax.block_until_ready((probs, value))

    # Correctness check against pure-JAX reference.
    # approx=True reciprocal in the kernel's softmax => ~1e-3-level tolerance
    # on probabilities; the critic value path has no reciprocal.
    ref_probs, ref_value = reference_forward(state, params)
    assert jnp.allclose(probs, ref_probs, atol=2e-3), "actor mismatch"
    assert jnp.allclose(value, ref_value, atol=1e-4), "critic mismatch"
    assert jnp.allclose(jnp.sum(probs, axis=-1), 1.0, atol=2e-3)

    # TODO(synk): Categorical sampling / action masking in act() is host-side
    # data-dependent control flow and is not part of the kernel.
    print("KERNEL_OK")
</pallas_src>

<mosaic_0001>
module attributes {stable_mosaic.version = 11 : i64} {
  func.func @_fused_actor_critic_kernel(%arg0: i32, %arg1: memref<8x32xf32, #tpu.memory_space<vmem>>, %arg2: memref<32x16xf32, #tpu.memory_space<vmem>>, %arg3: memref<1x16xf32, #tpu.memory_space<vmem>>, %arg4: memref<16x16xf32, #tpu.memory_space<vmem>>, %arg5: memref<1x16xf32, #tpu.memory_space<vmem>>, %arg6: memref<16x5xf32, #tpu.memory_space<vmem>>, %arg7: memref<1x5xf32, #tpu.memory_space<vmem>>, %arg8: memref<8x5xf32, #tpu.memory_space<vmem>>) attributes {dimension_semantics = [#tpu.dimension_semantics<parallel>], iteration_bounds = array<i64: 1>, scalar_prefetch = 0 : i64, scratch_operands = 0 : i64, tpu.core_type = #tpu.core_type<tc>, window_params = [{transform_indices = @transform_0, window_bounds = array<i64: 8, 32>}, {pipeline_mode = #tpu.pipeline_mode<synchronous>, transform_indices = @transform_1, window_bounds = array<i64: 32, 16>}, {pipeline_mode = #tpu.pipeline_mode<synchronous>, transform_indices = @transform_2, window_bounds = array<i64: 1, 16>}, {pipeline_mode = #tpu.pipeline_mode<synchronous>, transform_indices = @transform_3, window_bounds = array<i64: 16, 16>}, {pipeline_mode = #tpu.pipeline_mode<synchronous>, transform_indices = @transform_4, window_bounds = array<i64: 1, 16>}, {pipeline_mode = #tpu.pipeline_mode<synchronous>, transform_indices = @transform_5, window_bounds = array<i64: 16, 5>}, {pipeline_mode = #tpu.pipeline_mode<synchronous>, transform_indices = @transform_6, window_bounds = array<i64: 1, 5>}, {transform_indices = @transform_7, window_bounds = array<i64: 8, 5>}]} {
    %c0 = arith.constant 0 : index
    %c0_0 = arith.constant 0 : index
    %0 = vector.load %arg1[%c0, %c0_0] : memref<8x32xf32, #tpu.memory_space<vmem>>, vector<8x32xf32>
    %c0_1 = arith.constant 0 : index
    %c0_2 = arith.constant 0 : index
    %1 = vector.load %arg2[%c0_1, %c0_2] : memref<32x16xf32, #tpu.memory_space<vmem>>, vector<32x16xf32>
    %cst = arith.constant dense<0.000000e+00> : vector<8x16xf32>
    %2 = tpu.matmul %0, %1, %cst {dimension_numbers = #tpu.dot_dimension_numbers<[1], [0], [0], [1], [0, 0, 1, 1], [], []>} : vector<8x32xf32>, vector<32x16xf32>, vector<8x16xf32> -> vector<8x16xf32>
    %c0_3 = arith.constant 0 : index
    %c0_4 = arith.constant 0 : index
    %3 = vector.load %arg3[%c0_3, %c0_4] : memref<1x16xf32, #tpu.memory_space<vmem>>, vector<1x16xf32>
    %4 = vector.broadcast %3 : vector<1x16xf32> to vector<8x16xf32>
    %5 = arith.addf %2, %4 : vector<8x16xf32>
    %6 = math.tanh %5 : vector<8x16xf32>
    %c0_5 = arith.constant 0 : index
    %c0_6 = arith.constant 0 : index
    %7 = vector.load %arg4[%c0_5, %c0_6] : memref<16x16xf32, #tpu.memory_space<vmem>>, vector<16x16xf32>
    %cst_7 = arith.constant dense<0.000000e+00> : vector<8x16xf32>
    %8 = tpu.matmul %6, %7, %cst_7 {dimension_numbers = #tpu.dot_dimension_numbers<[1], [0], [0], [1], [0, 0, 1, 1], [], []>} : vector<8x16xf32>, vector<16x16xf32>, vector<8x16xf32> -> vector<8x16xf32>
    %c0_8 = arith.constant 0 : index
    %c0_9 = arith.constant 0 : index
    %9 = vector.load %arg5[%c0_8, %c0_9] : memref<1x16xf32, #tpu.memory_space<vmem>>, vector<1x16xf32>
    %10 = vector.broadcast %9 : vector<1x16xf32> to vector<8x16xf32>
    %11 = arith.addf %8, %10 : vector<8x16xf32>
    %12 = math.tanh %11 : vector<8x16xf32>
    %c0_10 = arith.constant 0 : index
    %c0_11 = arith.constant 0 : index
    %13 = vector.load %arg6[%c0_10, %c0_11] : memref<16x5xf32, #tpu.memory_space<vmem>>, vector<16x5xf32>
    %cst_12 = arith.constant dense<0.000000e+00> : vector<8x5xf32>
    %14 = tpu.matmul %12, %13, %cst_12 {dimension_numbers = #tpu.dot_dimension_numbers<[1], [0], [0], [1], [0, 0, 1, 1], [], []>} : vector<8x16xf32>, vector<16x5xf32>, vector<8x5xf32> -> vector<8x5xf32>
    %c0_13 = arith.constant 0 : index
    %c0_14 = arith.constant 0 : index
    %15 = vector.load %arg7[%c0_13, %c0_14] : memref<1x5xf32, #tpu.memory_space<vmem>>, vector<1x5xf32>
    %16 = vector.broadcast %15 : vector<1x5xf32> to vector<8x5xf32>
    %17 = arith.addf %14, %16 : vector<8x5xf32>
    %18 = tpu.iota {dimensions = array<i32: 1>} : vector<8x5xi32>
    %c4_i32 = arith.constant 4 : i32
    %19 = vector.broadcast %c4_i32 : i32 to vector<8x5xi32>
    %20 = arith.cmpi slt, %18, %19 : vector<8x5xi32>
    %cst_15 = arith.constant 0xFF800000 : f32
    %21 = vector.broadcast %cst_15 : f32 to vector<8x5xf32>
    %22 = arith.select %20, %17, %21 : vector<8x5xi1>, vector<8x5xf32>
    %cst_16 = arith.constant dense<0xFF800000> : vector<8xf32>
    %23 = vector.multi_reduction <maximumf>, %22, %cst_16 [1] : vector<8x5xf32> to vector<8xf32>
    %24 = vector.shape_cast %23 : vector<8xf32> to vector<8x1xf32>
    %25 = vector.broadcast %24 : vector<8x1xf32> to vector<8x5xf32>
    %26 = arith.subf %17, %25 : vector<8x5xf32>
    %27 = math.exp %26 : vector<8x5xf32>
    %cst_17 = arith.constant 0.000000e+00 : f32
    %28 = vector.broadcast %cst_17 : f32 to vector<8x5xf32>
    %29 = arith.select %20, %27, %28 : vector<8x5xi1>, vector<8x5xf32>
    %cst_18 = arith.constant dense<0.000000e+00> : vector<8xf32>
    %30 = vector.multi_reduction <add>, %29, %cst_18 [1] : vector<8x5xf32> to vector<8xf32>
    %31 = vector.shape_cast %30 : vector<8xf32> to vector<8x1xf32>
    %32 = tpu.reciprocal %31 {approx = true} : vector<8x1xf32> -> vector<8x1xf32>
    %33 = vector.broadcast %32 : vector<8x1xf32> to vector<8x5xf32>
    %34 = arith.mulf %29, %33 : vector<8x5xf32>
    %35 = arith.select %20, %34, %17 : vector<8x5xi1>, vector<8x5xf32>
    %c0_19 = arith.constant 0 : index
    %c0_20 = arith.constant 0 : index
    %36 = vector.load %arg8[%c0_19, %c0_20] : memref<8x5xf32, #tpu.memory_space<vmem>>, vector<8x5xf32>
    tpu.vector_store %arg8[%c0_19, %c0_20], %35 {strides = array<i32>} : memref<8x5xf32, #tpu.memory_space<vmem>>, vector<8x5xf32>,
    return
  }
  func.func @transform_0(%arg0: i32) -> (i32, i32) {
    %c0_i32 = arith.constant 0 : i32
    %c0_i32_0 = arith.constant 0 : i32
    return %arg0, %c0_i32 : i32, i32
  }
  func.func @transform_1(%arg0: i32) -> (i32, i32) {
    %c0_i32 = arith.constant 0 : i32
    %c0_i32_0 = arith.constant 0 : i32
    %c0_i32_1 = arith.constant 0 : i32
    return %c0_i32, %c0_i32_0 : i32, i32
  }
  func.func @transform_2(%arg0: i32) -> (i32, i32) {
    %c0_i32 = arith.constant 0 : i32
    %c0_i32_0 = arith.constant 0 : i32
    %c0_i32_1 = arith.constant 0 : i32
    return %c0_i32, %c0_i32_0 : i32, i32
  }
  func.func @transform_3(%arg0: i32) -> (i32, i32) {
    %c0_i32 = arith.constant 0 : i32
    %c0_i32_0 = arith.constant 0 : i32
    %c0_i32_1 = arith.constant 0 : i32
    return %c0_i32, %c0_i32_0 : i32, i32
  }
  func.func @transform_4(%arg0: i32) -> (i32, i32) {
    %c0_i32 = arith.constant 0 : i32
    %c0_i32_0 = arith.constant 0 : i32
    %c0_i32_1 = arith.constant 0 : i32
    return %c0_i32, %c0_i32_0 : i32, i32
  }
  func.func @transform_5(%arg0: i32) -> (i32, i32) {
    %c0_i32 = arith.constant 0 : i32
    %c0_i32_0 = arith.constant 0 : i32
    %c0_i32_1 = arith.constant 0 : i32
    return %c0_i32, %c0_i32_0 : i32, i32
  }
  func.func @transform_6(%arg0: i32) -> (i32, i32) {
    %c0_i32 = arith.constant 0 : i32
    %c0_i32_0 = arith.constant 0 : i32
    %c0_i32_1 = arith.constant 0 : i32
    return %c0_i32, %c0_i32_0 : i32, i32
  }
  func.func @transform_7(%arg0: i32) -> (i32, i32) {
    %c0_i32 = arith.constant 0 : i32
    %c0_i32_0 = arith.constant 0 : i32
    return %arg0, %c0_i32 : i32, i32
  }
}

</mosaic_0001>

<bundles_post_ra>
// kernel: actor_critic_forward.1
= control target key start
LH: loop header
LB: loop body
LE: loop exit
PB: predicated region body
PF: predicated region fallthrough
CT: control target
= control target key end

     0   :  { %v367_v0 = vmov 0.0|0.0   ;;  %vm368_vm0 = vmmov 0   ;;  %v369_v4 = vmov 0.0   ;;  %vm38_vm1 = vcmask 261120   ;;  %s460_s1 = inlined_call_operand.vmem [shape: f32[32,16], index: 1, kind: input, shape index: {}]   ;;  %s461_s0 = inlined_call_operand.vmem [shape: f32[8,32], index: 0, kind: input, shape index: {}]   ;;  %s462_s3 = inlined_call_operand.vmem [shape: f32[16,16], index: 3, kind: input, shape index: {}]   ;;  %s463_s2 = inlined_call_operand.vmem [shape: f32[1,16], index: 2, kind: input, shape index: {}]   ;;  %s464_s5 = inlined_call_operand.vmem [shape: f32[16,5], index: 5, kind: input, shape index: {}]   ;;  %s465_s4 = inlined_call_operand.vmem [shape: f32[1,16], index: 4, kind: input, shape index: {}]   ;;  %s466_s6 = inlined_call_operand.vmem [shape: f32[1,5], index: 6, kind: input, shape index: {}]   ;;  %s467_s7 = inlined_call_operand.vmem [shape: f32[8,5], index: 7, kind: output, shape index: {}]  }
   0x1   :  { %344 = vmatprep.subr.bf16.mxu0 %v367_v0  ;;  %v27_v1 = vld [vmem:[%s460_s1] sm:$0xff]  ;;  %v28_v2 = vld [vmem:[%s460_s1 + $0x8] sm:$0xff]  ;;  %v29_v3 = vld [vmem:[%s460_s1 + $0x10] sm:$0xff]  ;;  %327 = vmatprep.mubr.msk.f32.mxu0 %vm368_vm0, %v369_v4  ;;  %vm122_vm2 = vcmask 130048   ;;  %v279_v25 = vlaneseq  ;;  %vm283_vm4 = vcmask 39936  }
   0x2   :  { %v345_v5 = vpack.c.bf16 %v28_v2, %v27_v1  ;;  %v30_v6 = vld [vmem:[%s460_s1 + $0x18] sm:$0xff]  ;;  %350 = vmatprep.subr.bf16.mxu1 %v367_v0  ;;  %334 = vmatprep.mubr.msk.f32.mxu1 %vm368_vm0, %v369_v4  ;;  %v26_v8 = vld [vmem:[%s461_s0] sm:$0xff]  ;;  %v114_v10 = vld [vmem:[%s462_s3 + $0x8] sm:$0xff] }
   0x3   :  { %v348_v7 = vpack.c.bf16 %v30_v6, %v29_v3  ;;  %v113_v9 = vld [vmem:[%s462_s3] sm:$0xff]  ;;  %v198_v18 = vld [vmem:[%s464_s5 + $0x8] sm:$0xff]  ;;  %v280_v26 = vand.u32 127, %v279_v25 }
   0x4   :  { %346 = vmatpush3.bf16.msra.mxu0 %v345_v5  ;;  %v351_v11 = vpack.c.bf16 %v114_v10, %v113_v9  ;;  %v302_v12 = vld [vmem:[%s463_s2] ss:$0 sm:$0xff] }
   0x5   :  { %347 = vmatprep.subr.bf16.mxu0 %v367_v0  ;;  %v197_v17 = vld [vmem:[%s464_s5] sm:$0xff]  ;;  %vm281_vm3 = vcmp.lt.s32.totalorder %v280_v26, 4 }
   0x6   :  { %352 = vmatpush3.bf16.msra.mxu1 %v351_v11  ;;  %v354_v19 = vpack.c.bf16 %v198_v18, %v197_v17  ;;  %v304_v20 = vld [vmem:[%s465_s4] ss:$0 sm:$0xff] }
   0x7   :  { %353 = vmatprep.subr.bf16.mxu1 %v367_v0  ;;  %v306_v27 = vld [vmem:[%s466_s6] ss:$0 sm:$0xff] }
   0x8   :  { %349 = vmatpush3.bf16.msra.mxu0 %v348_v7 }
   0xb   :  { %328 = vmatmul.mubr.msk.f32.vlgmr.msra.gmra.mrb[0].mxu0 %vm38_vm1, %v26_v8 }
  0xde   :  { %v108_v13 = vpop.f32.mrb[0].mxu0 }
  0xdf   :  { %v109_v14 = vadd.f32 %v302_v12, %v108_v13  ;;  %v329_v15 = vpop.f32.mrb[1].mxu0 }
  0xe1   :  { %359 = vtanh.f32 %v109_v14 }
  0xeb   :  { %v360_v16 = vpop.eup %359 }
  0xec   :  { %335 = vmatmul.mubr.msk.f32.vlgmr.msra.gmra.mrb[0].mxu1 %vm122_vm2, %v360_v16 }
  0xed   :  { %341 = vmatprep.mubr.msk.f32.mxu1 %vm368_vm0, %v369_v4  ;;  %355 = vmatpush3.bf16.msra.mxu1 %v354_v19 }
 0x1bf   :  { %v192_v21 = vpop.f32.mrb[0].mxu1 }
 0x1c0   :  { %v193_v22 = vadd.f32 %v304_v20, %v192_v21  ;;  %v336_v23 = vpop.f32.mrb[1].mxu1 }
 0x1c2   :  { %361 = vtanh.f32 %v193_v22 }
 0x1cc   :  { %v362_v24 = vpop.eup %361 }
 0x1cd   :  { %342 = vmatmul.mubr.msk.f32.vlgmr.msra.gmra.mrb[2].mxu1 %vm122_vm2, %v362_v24 }
 0x2a0   :  { %v275_v28 = vpop.f32.mrb[2].mxu1 }
 0x2a1   :  { %v276_v29 = vadd.f32 %v306_v27, %v275_v28  ;;  %v343_v30 = vpop.f32.mrb[3].mxu1 }
 0x2a3   :  { %v282_v31 = vsel %vm281_vm3, %v276_v29, -inf }
 0x2a4   :  { %v284_v32 = vsel %vm283_vm4, %v282_v31, -inf }
 0x2a5   :  { %285 = vmax.xlane.f32.xlu0 %v284_v32 }
 0x332   :  { %v286_v33 = vpop.xlane.xlu0 %285 }
 0x333   :  { %v287_v34 = vsub.f32 %v276_v29, %v286_v33 }
 0x335   :  { %v288_v35 = vmul.f32 1.442695, %v287_v34 }
 0x337   :  { %363 = vpow2.f32 %v288_v35 }
 0x341   :  { %v364_v36 = vpop.eup %363 }
 0x342   :  { %v290_v37 = vsel %vm281_vm3, %v364_v36, 0.0 }
 0x343   :  { %v291_v38 = vsel %vm283_vm4, %v290_v37, 0.0 }
 0x344   :  { %292 = vadd.xlane.f32.xlu0 %v291_v38 }
 0x3d1   :  { %v293_v39 = vpop.xlane.xlu0 %292 }
 0x3d2   :  { %365 = vrcp.f32 %v293_v39 }
 0x3dc   :  { %v366_v40 = vpop.eup %365 }
 0x3dd   :  { %v295_v41 = vmul.f32 %v366_v40, %v290_v37 }
 0x3df   :  { %v296_v42 = vsel %vm281_vm3, %v295_v41, %v276_v29 }
 0x3e0   :  { %297 = vst.msk [vmem:[%s467_s7] sm:$0xff] %vm283_vm4, %v296_v42 }

</bundles_post_ra>
